<compile_context>
chip_gen: v6e
topology: v6e:2x2x1
jax: 0.10.0
libtpu: 0.0.40
codegen_flags: <defaults>
</compile_context>

<pallas_src>
import jax
import jax.numpy as jnp
from jax.experimental import pallas as pl
from jax.experimental.pallas import tpu as pltpu


def _round_up(x: int, m: int) -> int:
    return (x + m - 1) // m * m


def _metric_kernel(x_ref, y_ref, o_ref, acc_ref):
    # x_ref, y_ref: (tb, td) input-dtype tiles in VMEM.
    # o_ref:        (tb, 1)  f32 output tile (resident across the D axis).
    # acc_ref:      (tb, 128) f32 lane-wise partial sums (VMEM scratch).
    k = pl.program_id(1)

    @pl.when(k == 0)
    def _init():
        acc_ref[...] = jnp.zeros_like(acc_ref)

    tb, td = x_ref.shape
    n_chunks = td // 128  # td is lane-aligned by construction
    # Identity transform is a no-op; upcast + squared-diff on the VPU,
    # accumulating lane-wise so no XLU reduce is issued per D step.  Chunked
    # ref slicing keeps vreg pressure low (no full-tile value kept live).
    for c in range(n_chunks):
        sl = slice(c * 128, (c + 1) * 128)
        dlt = x_ref[:, sl].astype(jnp.float32) - y_ref[:, sl].astype(jnp.float32)
        acc_ref[...] += dlt * dlt

    @pl.when(k == pl.num_programs(1) - 1)
    def _finalize():
        # One cross-lane reduce + one sqrt + one (masked) store per batch tile.
        total = jnp.sum(acc_ref[...], axis=-1, keepdims=True)  # (tb, 1)
        o_ref[...] = jnp.sqrt(total)


def euclidean_metric(x: jax.Array, y: jax.Array) -> jax.Array:
    """Per-batch L2 distance between x and y (arbitrary trailing dims)."""
    assert x.shape == y.shape
    b = x.shape[0]
    xf = x.reshape(b, -1)
    yf = y.reshape(b, -1)
    d = xf.shape[1]

    # Tile sizes: sublane-aligned batch tiles, lane-aligned reduction tiles.
    tb = min(256, _round_up(b, 8))
    td = min(2048, _round_up(d, 128))
    b_pad = _round_up(b, tb)
    d_pad = _round_up(d, td)

    # Zero-pad both operands identically: padded positions contribute
    # (0 - 0)^2 = 0 to the sum, so the metric is unchanged.  Padding is only
    # materialized when the shape is actually misaligned.
    if (b_pad, d_pad) != (b, d):
        xf = jnp.pad(xf, ((0, b_pad - b), (0, d_pad - d)))
        yf = jnp.pad(yf, ((0, b_pad - b), (0, d_pad - d)))

    grid = (b_pad // tb, d_pad // td)  # reduction (D) axis last

    out = pl.pallas_call(
        _metric_kernel,
        out_shape=jax.ShapeDtypeStruct((b_pad, 1), jnp.float32),
        grid_spec=pltpu.PrefetchScalarGridSpec(
            num_scalar_prefetch=0,
            grid=grid,
            in_specs=[
                pl.BlockSpec((tb, td), lambda i, k: (i, k)),
                pl.BlockSpec((tb, td), lambda i, k: (i, k)),
            ],
            out_specs=pl.BlockSpec((tb, 1), lambda i, k: (i, 0)),
            scratch_shapes=[pltpu.VMEM((tb, 128), jnp.float32)],
        ),
        compiler_params=pltpu.CompilerParams(
            dimension_semantics=("parallel", "arbitrary"),
        ),
    )(xf, yf)
    return out[:b, 0]


if __name__ == "__main__":
    key = jax.random.PRNGKey(0)
    kx, ky = jax.random.split(key)
    # Small NCHW shapes consistent with a conv-style input.
    x = jax.random.normal(kx, (2, 4, 16, 16), dtype=jnp.float32)
    y = jax.random.normal(ky, (2, 4, 16, 16), dtype=jnp.float32)

    dist = jax.block_until_ready(euclidean_metric(x, y))

    # Reference in plain JAX.
    ref = jnp.sqrt(
        jnp.sum((x.reshape(2, -1) - y.reshape(2, -1)) ** 2, axis=-1)
    )
    assert dist.shape == (2,)
    assert jnp.allclose(dist, ref, rtol=1e-5, atol=1e-5)
    print("KERNEL_OK")
</pallas_src>

<mosaic_0001>
module attributes {stable_mosaic.version = 11 : i64} {
  func.func @_metric_kernel(%arg0: i32, %arg1: i32, %arg2: memref<8x1024xf32, #tpu.memory_space<vmem>>, %arg3: memref<8x1024xf32, #tpu.memory_space<vmem>>, %arg4: memref<8x1xf32, #tpu.memory_space<vmem>>, %arg5: memref<8x128xf32, #tpu.memory_space<vmem>>) attributes {dimension_semantics = [#tpu.dimension_semantics<parallel>, #tpu.dimension_semantics<arbitrary>], iteration_bounds = array<i64: 1, 1>, scalar_prefetch = 0 : i64, scratch_operands = 1 : i64, tpu.core_type = #tpu.core_type<tc>, window_params = [{transform_indices = @transform_0, window_bounds = array<i64: 8, 1024>}, {transform_indices = @transform_1, window_bounds = array<i64: 8, 1024>}, {transform_indices = @transform_2, window_bounds = array<i64: 8, 1>}]} {
    %c0_i32 = arith.constant 0 : i32
    %0 = arith.cmpi eq, %arg1, %c0_i32 : i32
    %1 = arith.extui %0 : i1 to i32
    %c0_i32_0 = arith.constant 0 : i32
    %2 = arith.cmpi ne, %1, %c0_i32_0 : i32
    scf.if %2 {
      %cst = arith.constant 0.000000e+00 : f32
      %62 = vector.broadcast %cst : f32 to vector<8x128xf32>
      %c0_59 = arith.constant 0 : index
      %c0_60 = arith.constant 0 : index
      %63 = vector.load %arg5[%c0_59, %c0_60] : memref<8x128xf32, #tpu.memory_space<vmem>>, vector<8x128xf32>
      tpu.vector_store %arg5[%c0_59, %c0_60], %62 {strides = array<i32>} : memref<8x128xf32, #tpu.memory_space<vmem>>, vector<8x128xf32>,
    } else {
    }
    %c0 = arith.constant 0 : index
    %c0_1 = arith.constant 0 : index
    %3 = vector.load %arg2[%c0, %c0_1] : memref<8x1024xf32, #tpu.memory_space<vmem>>, vector<8x128xf32>
    %c0_2 = arith.constant 0 : index
    %c0_3 = arith.constant 0 : index
    %4 = vector.load %arg3[%c0_2, %c0_3] : memref<8x1024xf32, #tpu.memory_space<vmem>>, vector<8x128xf32>
    %5 = arith.subf %3, %4 : vector<8x128xf32>
    %c0_4 = arith.constant 0 : index
    %c0_5 = arith.constant 0 : index
    %6 = vector.load %arg5[%c0_4, %c0_5] : memref<8x128xf32, #tpu.memory_space<vmem>>, vector<8x128xf32>
    %7 = arith.mulf %5, %5 : vector<8x128xf32>
    %8 = arith.addf %6, %7 : vector<8x128xf32>
    %c0_6 = arith.constant 0 : index
    %c0_7 = arith.constant 0 : index
    %9 = vector.load %arg5[%c0_6, %c0_7] : memref<8x128xf32, #tpu.memory_space<vmem>>, vector<8x128xf32>
    tpu.vector_store %arg5[%c0_6, %c0_7], %8 {strides = array<i32>} : memref<8x128xf32, #tpu.memory_space<vmem>>, vector<8x128xf32>,
    %c0_8 = arith.constant 0 : index
    %c128 = arith.constant 128 : index
    %10 = vector.load %arg2[%c0_8, %c128] : memref<8x1024xf32, #tpu.memory_space<vmem>>, vector<8x128xf32>
    %c0_9 = arith.constant 0 : index
    %c128_10 = arith.constant 128 : index
    %11 = vector.load %arg3[%c0_9, %c128_10] : memref<8x1024xf32, #tpu.memory_space<vmem>>, vector<8x128xf32>
    %12 = arith.subf %10, %11 : vector<8x128xf32>
    %c0_11 = arith.constant 0 : index
    %c0_12 = arith.constant 0 : index
    %13 = vector.load %arg5[%c0_11, %c0_12] : memref<8x128xf32, #tpu.memory_space<vmem>>, vector<8x128xf32>
    %14 = arith.mulf %12, %12 : vector<8x128xf32>
    %15 = arith.addf %13, %14 : vector<8x128xf32>
    %c0_13 = arith.constant 0 : index
    %c0_14 = arith.constant 0 : index
    %16 = vector.load %arg5[%c0_13, %c0_14] : memref<8x128xf32, #tpu.memory_space<vmem>>, vector<8x128xf32>
    tpu.vector_store %arg5[%c0_13, %c0_14], %15 {strides = array<i32>} : memref<8x128xf32, #tpu.memory_space<vmem>>, vector<8x128xf32>,
    %c0_15 = arith.constant 0 : index
    %c256 = arith.constant 256 : index
    %17 = vector.load %arg2[%c0_15, %c256] : memref<8x1024xf32, #tpu.memory_space<vmem>>, vector<8x128xf32>
    %c0_16 = arith.constant 0 : index
    %c256_17 = arith.constant 256 : index
    %18 = vector.load %arg3[%c0_16, %c256_17] : memref<8x1024xf32, #tpu.memory_space<vmem>>, vector<8x128xf32>
    %19 = arith.subf %17, %18 : vector<8x128xf32>
    %c0_18 = arith.constant 0 : index
    %c0_19 = arith.constant 0 : index
    %20 = vector.load %arg5[%c0_18, %c0_19] : memref<8x128xf32, #tpu.memory_space<vmem>>, vector<8x128xf32>
    %21 = arith.mulf %19, %19 : vector<8x128xf32>
    %22 = arith.addf %20, %21 : vector<8x128xf32>
    %c0_20 = arith.constant 0 : index
    %c0_21 = arith.constant 0 : index
    %23 = vector.load %arg5[%c0_20, %c0_21] : memref<8x128xf32, #tpu.memory_space<vmem>>, vector<8x128xf32>
    tpu.vector_store %arg5[%c0_20, %c0_21], %22 {strides = array<i32>} : memref<8x128xf32, #tpu.memory_space<vmem>>, vector<8x128xf32>,
    %c0_22 = arith.constant 0 : index
    %c384 = arith.constant 384 : index
    %24 = vector.load %arg2[%c0_22, %c384] : memref<8x1024xf32, #tpu.memory_space<vmem>>, vector<8x128xf32>
    %c0_23 = arith.constant 0 : index
    %c384_24 = arith.constant 384 : index
    %25 = vector.load %arg3[%c0_23, %c384_24] : memref<8x1024xf32, #tpu.memory_space<vmem>>, vector<8x128xf32>
    %26 = arith.subf %24, %25 : vector<8x128xf32>
    %c0_25 = arith.constant 0 : index
    %c0_26 = arith.constant 0 : index
    %27 = vector.load %arg5[%c0_25, %c0_26] : memref<8x128xf32, #tpu.memory_space<vmem>>, vector<8x128xf32>
    %28 = arith.mulf %26, %26 : vector<8x128xf32>
    %29 = arith.addf %27, %28 : vector<8x128xf32>
    %c0_27 = arith.constant 0 : index
    %c0_28 = arith.constant 0 : index
    %30 = vector.load %arg5[%c0_27, %c0_28] : memref<8x128xf32, #tpu.memory_space<vmem>>, vector<8x128xf32>
    tpu.vector_store %arg5[%c0_27, %c0_28], %29 {strides = array<i32>} : memref<8x128xf32, #tpu.memory_space<vmem>>, vector<8x128xf32>,
    %c0_29 = arith.constant 0 : index
    %c512 = arith.constant 512 : index
    %31 = vector.load %arg2[%c0_29, %c512] : memref<8x1024xf32, #tpu.memory_space<vmem>>, vector<8x128xf32>
    %c0_30 = arith.constant 0 : index
    %c512_31 = arith.constant 512 : index
    %32 = vector.load %arg3[%c0_30, %c512_31] : memref<8x1024xf32, #tpu.memory_space<vmem>>, vector<8x128xf32>
    %33 = arith.subf %31, %32 : vector<8x128xf32>
    %c0_32 = arith.constant 0 : index
    %c0_33 = arith.constant 0 : index
    %34 = vector.load %arg5[%c0_32, %c0_33] : memref<8x128xf32, #tpu.memory_space<vmem>>, vector<8x128xf32>
    %35 = arith.mulf %33, %33 : vector<8x128xf32>
    %36 = arith.addf %34, %35 : vector<8x128xf32>
    %c0_34 = arith.constant 0 : index
    %c0_35 = arith.constant 0 : index
    %37 = vector.load %arg5[%c0_34, %c0_35] : memref<8x128xf32, #tpu.memory_space<vmem>>, vector<8x128xf32>
    tpu.vector_store %arg5[%c0_34, %c0_35], %36 {strides = array<i32>} : memref<8x128xf32, #tpu.memory_space<vmem>>, vector<8x128xf32>,
    %c0_36 = arith.constant 0 : index
    %c640 = arith.constant 640 : index
    %38 = vector.load %arg2[%c0_36, %c640] : memref<8x1024xf32, #tpu.memory_space<vmem>>, vector<8x128xf32>
    %c0_37 = arith.constant 0 : index
    %c640_38 = arith.constant 640 : index
    %39 = vector.load %arg3[%c0_37, %c640_38] : memref<8x1024xf32, #tpu.memory_space<vmem>>, vector<8x128xf32>
    %40 = arith.subf %38, %39 : vector<8x128xf32>
    %c0_39 = arith.constant 0 : index
    %c0_40 = arith.constant 0 : index
    %41 = vector.load %arg5[%c0_39, %c0_40] : memref<8x128xf32, #tpu.memory_space<vmem>>, vector<8x128xf32>
    %42 = arith.mulf %40, %40 : vector<8x128xf32>
    %43 = arith.addf %41, %42 : vector<8x128xf32>
    %c0_41 = arith.constant 0 : index
    %c0_42 = arith.constant 0 : index
    %44 = vector.load %arg5[%c0_41, %c0_42] : memref<8x128xf32, #tpu.memory_space<vmem>>, vector<8x128xf32>
    tpu.vector_store %arg5[%c0_41, %c0_42], %43 {strides = array<i32>} : memref<8x128xf32, #tpu.memory_space<vmem>>, vector<8x128xf32>,
    %c0_43 = arith.constant 0 : index
    %c768 = arith.constant 768 : index
    %45 = vector.load %arg2[%c0_43, %c768] : memref<8x1024xf32, #tpu.memory_space<vmem>>, vector<8x128xf32>
    %c0_44 = arith.constant 0 : index
    %c768_45 = arith.constant 768 : index
    %46 = vector.load %arg3[%c0_44, %c768_45] : memref<8x1024xf32, #tpu.memory_space<vmem>>, vector<8x128xf32>
    %47 = arith.subf %45, %46 : vector<8x128xf32>
    %c0_46 = arith.constant 0 : index
    %c0_47 = arith.constant 0 : index
    %48 = vector.load %arg5[%c0_46, %c0_47] : memref<8x128xf32, #tpu.memory_space<vmem>>, vector<8x128xf32>
    %49 = arith.mulf %47, %47 : vector<8x128xf32>
    %50 = arith.addf %48, %49 : vector<8x128xf32>
    %c0_48 = arith.constant 0 : index
    %c0_49 = arith.constant 0 : index
    %51 = vector.load %arg5[%c0_48, %c0_49] : memref<8x128xf32, #tpu.memory_space<vmem>>, vector<8x128xf32>
    tpu.vector_store %arg5[%c0_48, %c0_49], %50 {strides = array<i32>} : memref<8x128xf32, #tpu.memory_space<vmem>>, vector<8x128xf32>,
    %c0_50 = arith.constant 0 : index
    %c896 = arith.constant 896 : index
    %52 = vector.load %arg2[%c0_50, %c896] : memref<8x1024xf32, #tpu.memory_space<vmem>>, vector<8x128xf32>
    %c0_51 = arith.constant 0 : index
    %c896_52 = arith.constant 896 : index
    %53 = vector.load %arg3[%c0_51, %c896_52] : memref<8x1024xf32, #tpu.memory_space<vmem>>, vector<8x128xf32>
    %54 = arith.subf %52, %53 : vector<8x128xf32>
    %c0_53 = arith.constant 0 : index
    %c0_54 = arith.constant 0 : index
    %55 = vector.load %arg5[%c0_53, %c0_54] : memref<8x128xf32, #tpu.memory_space<vmem>>, vector<8x128xf32>
    %56 = arith.mulf %54, %54 : vector<8x128xf32>
    %57 = arith.addf %55, %56 : vector<8x128xf32>
    %c0_55 = arith.constant 0 : index
    %c0_56 = arith.constant 0 : index
    %58 = vector.load %arg5[%c0_55, %c0_56] : memref<8x128xf32, #tpu.memory_space<vmem>>, vector<8x128xf32>
    tpu.vector_store %arg5[%c0_55, %c0_56], %57 {strides = array<i32>} : memref<8x128xf32, #tpu.memory_space<vmem>>, vector<8x128xf32>,
    %c0_i32_57 = arith.constant 0 : i32
    %59 = arith.cmpi eq, %arg1, %c0_i32_57 : i32
    %60 = arith.extui %59 : i1 to i32
    %c0_i32_58 = arith.constant 0 : i32
    %61 = arith.cmpi ne, %60, %c0_i32_58 : i32
    scf.if %61 {
      %c0_59 = arith.constant 0 : index
      %c0_60 = arith.constant 0 : index
      %62 = vector.load %arg5[%c0_59, %c0_60] : memref<8x128xf32, #tpu.memory_space<vmem>>, vector<8x128xf32>
      %cst = arith.constant dense<0.000000e+00> : vector<8xf32>
      %63 = vector.multi_reduction <add>, %62, %cst [1] : vector<8x128xf32> to vector<8xf32>
      %64 = vector.shape_cast %63 : vector<8xf32> to vector<8x1xf32>
      %65 = math.sqrt %64 : vector<8x1xf32>
      %c0_61 = arith.constant 0 : index
      %c0_62 = arith.constant 0 : index
      %66 = vector.load %arg4[%c0_61, %c0_62] : memref<8x1xf32, #tpu.memory_space<vmem>>, vector<8x1xf32>
      tpu.vector_store %arg4[%c0_61, %c0_62], %65 {strides = array<i32>} : memref<8x1xf32, #tpu.memory_space<vmem>>, vector<8x1xf32>,
    } else {
    }
    return
  }
  func.func @transform_0(%arg0: i32, %arg1: i32) -> (i32, i32) {
    %c0_i32 = arith.constant 0 : i32
    return %arg0, %arg1 : i32, i32
  }
  func.func @transform_1(%arg0: i32, %arg1: i32) -> (i32, i32) {
    %c0_i32 = arith.constant 0 : i32
    return %arg0, %arg1 : i32, i32
  }
  func.func @transform_2(%arg0: i32, %arg1: i32) -> (i32, i32) {
    %c0_i32 = arith.constant 0 : i32
    %c0_i32_0 = arith.constant 0 : i32
    return %arg0, %c0_i32 : i32, i32
  }
}

</mosaic_0001>

<bundles_post_ra>
// kernel: tpu_custom_call.1
= control target key start
LH: loop header
LB: loop body
LE: loop exit
PB: predicated region body
PF: predicated region fallthrough
CT: control target
= control target key end

     0   :  { %7 = vsyncpa [#allocation4], 0  ;;  %s191_s0 = inlined_call_operand.hbm [shape: f32[8,1024], index: 0, kind: input, shape index: {}]   ;;  %s192_s1 = inlined_call_operand.hbm [shape: f32[8,1024], index: 1, kind: input, shape index: {}]   ;;  %s193_s2 = inlined_call_operand.vmem [shape: f32[8,1], index: 2, kind: output, shape index: {}]  }
   0x1   :  { %8 = vsyncpa [#allocation6], 0  ;;  %s165_s9 = smov [#allocation3]   ;;  %s166_s11 = smov [#allocation5]  }
   0x2   :  { %s15_s10 = sshll.u32 %s165_s9, 4  ;;  %s25_s12 = sshll.u32 %s166_s11, 4  ;;  %s16_s10 = int_to_ptr.vmem [resolvable:$true] %s15_s10  ;;  %s26_s12 = int_to_ptr.vmem [resolvable:$true] %s25_s12 }
   0x3   :  { %s129_s13 = scalar_lea.vmem %s16_s10, 1024  ;;  %p134_p1 = scmp.lt.s32.totalorder %s16_s10, %s16_s10 }
   0x4   :  { %p130_p0 = scmp.ne.s32.totalorder %s16_s10, %s129_s13  ;;  %p135_p2 = scmp.lt.s32.totalorder %s129_s13, %s129_s13 }
   0x6   :  { %p136_p3 = por %p135_p2, %p134_p1 }
   0x8   :  { %p137_p4 = pnand %p136_p3, %p130_p0 }
   0xa   :  { %140 = shalt.err (!%p137_p4)
}
   0xb   :  { %18 = dma.hbm_to_vmem [thread:$0]  %s191_s0, 1024, %s16_s10, [#allocation4]  }
   0xc   :  { %s149_s16 = scalar_lea.vmem %s26_s12, 1024  ;;  %p154_p6 = scmp.lt.s32.totalorder %s26_s12, %s26_s12 }
   0xd   :  { %p150_p5 = scmp.ne.s32.totalorder %s26_s12, %s149_s16  ;;  %p155_p7 = scmp.lt.s32.totalorder %s149_s16, %s149_s16 }
   0xf   :  { %p156_p8 = por %p155_p7, %p154_p6 }
  0x11   :  { %p157_p9 = pnand %p156_p8, %p150_p5 }
  0x13   :  { %160 = shalt.err (!%p157_p9)
}
  0x14   :  { %28 = dma.hbm_to_vmem [thread:$0]  %s192_s1, 1024, %s26_s12, [#allocation6]  }
  0x15   :  { %161 = dma.done.wait [#allocation4], 1024  }
  0x16   :  { %162 = vsyncadd [#allocation4], 4294966272 }
  0x17   :  { %163 = dma.done.wait [#allocation6], 1024  }
  0x18   :  { %164 = vsyncadd [#allocation6], 4294966272  ;;  %v40_v0 = vld [vmem:[#allocation3] sm:$0xff]  ;;  %v47_v2 = vld [vmem:[#allocation3 + $0x8] sm:$0xff]  ;;  %vm109_vm1 = vcmask 7168  }
  0x19   :  { %v41_v1 = vld [vmem:[#allocation5] sm:$0xff]  ;;  %v48_v4 = vld [vmem:[#allocation5 + $0x8] sm:$0xff]  ;;  %v54_v5 = vld [vmem:[#allocation3 + $0x10] sm:$0xff] }
  0x1a   :  { %v42_v3 = vsub.f32 %v40_v0, %v41_v1  ;;  %v55_v6 = vld [vmem:[#allocation5 + $0x10] sm:$0xff]  ;;  %v49_v7 = vsub.f32 %v47_v2, %v48_v4  ;;  %v61_v9 = vld [vmem:[#allocation3 + $0x18] sm:$0xff]  ;;  %v68_v11 = vld [vmem:[#allocation3 + $0x20] sm:$0xff] }
  0x1b   :  { %v56_v8 = vsub.f32 %v54_v5, %v55_v6  ;;  %v62_v10 = vld [vmem:[#allocation5 + $0x18] sm:$0xff]  ;;  %v69_v14 = vld [vmem:[#allocation5 + $0x20] sm:$0xff]  ;;  %v75_v15 = vld [vmem:[#allocation3 + $0x28] sm:$0xff] }
  0x1c   :  { %v44_v12 = vmul.f32 %v42_v3, %v42_v3  ;;  %v63_v13 = vsub.f32 %v61_v9, %v62_v10  ;;  %v76_v16 = vld [vmem:[#allocation5 + $0x28] sm:$0xff]  ;;  %v51_v17 = vmul.f32 %v49_v7, %v49_v7  ;;  %v70_v19 = vsub.f32 %v68_v11, %v69_v14  ;;  %v82_v20 = vld [vmem:[#allocation3 + $0x30] sm:$0xff]  ;;  %v89_v25 = vld [vmem:[#allocation3 + $0x38] sm:$0xff] }
  0x1d   :  { %v58_v18 = vmul.f32 %v56_v8, %v56_v8  ;;  %v83_v21 = vld [vmem:[#allocation5 + $0x30] sm:$0xff]  ;;  %v77_v24 = vsub.f32 %v75_v15, %v76_v16  ;;  %v90_v26 = vld [vmem:[#allocation5 + $0x38] sm:$0xff] }
  0x1e   :  { %v52_v22 = vadd.f32 %v51_v17, %v44_v12  ;;  %v65_v23 = vmul.f32 %v63_v13, %v63_v13  ;;  %v72_v28 = vmul.f32 %v70_v19, %v70_v19  ;;  %v84_v29 = vsub.f32 %v82_v20, %v83_v21 }
  0x1f   :  { %v79_v31 = vmul.f32 %v77_v24, %v77_v24  ;;  %v91_v32 = vsub.f32 %v89_v25, %v90_v26 }
  0x20   :  { %v59_v27 = vadd.f32 %v58_v18, %v52_v22  ;;  %v86_v34 = vmul.f32 %v84_v29, %v84_v29 }
  0x21   :  { %v93_v36 = vmul.f32 %v91_v32, %v91_v32 }
  0x22   :  { %v66_v30 = vadd.f32 %v65_v23, %v59_v27 }
  0x24   :  { %v73_v33 = vadd.f32 %v72_v28, %v66_v30 }
  0x26   :  { %v80_v35 = vadd.f32 %v79_v31, %v73_v33 }
  0x28   :  { %v87_v37 = vadd.f32 %v86_v34, %v80_v35 }
  0x2a   :  { %v94_v38 = vadd.f32 %v93_v36, %v87_v37 }
  0x2c   :  { %100 = vadd.xlane.f32.xlu0 %v94_v38 }
  0xb5   :  { %v101_v39 = vpop.xlane.xlu0 %100 }
  0xb6   :  { %119 = vrsqrt.f32 %v101_v39  ;;  %vm104_vm0 = vcmp.eq.f32.partialorder %v101_v39, inf  ;;  %v107_v42 = vand.u32 2147483648, %v101_v39  ;;  %vm106_vm2 = vcmp.eq.f32.partialorder %v101_v39, 0.0 }
  0xc3   :  { %v120_v40 = vpop.eup %119 }
  0xc4   :  { %v103_v41 = vmul.f32 %v120_v40, %v101_v39 }
  0xc6   :  { %v105_v43 = vsel %vm104_vm0, %v101_v39, %v103_v41 }
  0xc7   :  { %v108_v44 = vsel %vm106_vm2, %v107_v42, %v105_v43 }
  0xc8   :  { %110 = vst.msk [vmem:[%s193_s2] sm:$0xff] %vm109_vm1, %v108_v44 }
  0xc9   :  { %115 = vsyncpa [#allocation4], 1 }
  0xca   :  { %116 = vsyncpa [#allocation6], 1 }

</bundles_post_ra>
